<compile_context>
chip_gen: v6e
topology: v6e:2x2x1
jax: 0.10.0
libtpu: 0.0.40
codegen_flags: <defaults>
</compile_context>

<pallas_src>
import jax
import jax.numpy as jnp
from jax.experimental import pallas as pl
from jax.experimental.pallas import tpu as pltpu


# ---------------------------------------------------------------------------
# Pallas kernel: complex mode mixing, mode axis on the lanes.
# ---------------------------------------------------------------------------
def _spectral_mix_kernel(ar_ref, ai_ref, wr_ref, wi_ref, or_ref, oi_ref):
    """One lane-block of Fourier modes.

    ar_ref/ai_ref: (B,    C_in,  TM)  real / imag activation modes
    wr_ref/wi_ref: (C_in, C_out, TM)  real / imag spectral weights
    or_ref/oi_ref: (B,    C_out, TM)  real / imag mixed output modes
    """
    ar = ar_ref[...]
    ai = ai_ref[...]
    wr = wr_ref[...]
    wi = wi_ref[...]
    cin = ar.shape[1]

    acc_r = None
    acc_i = None
    # Unrolled VPU contraction over C_in; each lane is one Fourier mode.
    for i in range(cin):
        a_r = ar[:, i, :][:, None, :]          # (B, 1, TM)
        a_i = ai[:, i, :][:, None, :]
        w_r = wr[i][None, :, :]                # (1, C_out, TM)
        w_i = wi[i][None, :, :]
        # Gauss 3-multiply complex product:
        #   k1 = wr*(ar+ai), k2 = ar*(wi-wr), k3 = ai*(wi+wr)
        #   real = k1 - k3,  imag = k1 + k2
        k1 = (a_r + a_i) * w_r                 # (B, C_out, TM)
        k2 = a_r * (w_i - w_r)
        k3 = a_i * (w_i + w_r)
        r = k1 - k3
        im = k1 + k2
        if acc_r is None:
            acc_r, acc_i = r, im
        else:
            acc_r = acc_r + r
            acc_i = acc_i + im

    or_ref[...] = acc_r
    oi_ref[...] = acc_i


# ---------------------------------------------------------------------------
# Tiling / VMEM heuristics (padded bytes, per-operand double-buffering).
# ---------------------------------------------------------------------------
def _round_up(x, m):
    return (x + m - 1) // m * m


def _vmem_capacity_bytes():
    try:
        return int(pltpu.get_tpu_info().vmem_capacity_bytes)
    except Exception:
        return 64 * 1024 * 1024          # conservative (v7x per-TC size)


def _choose_mode_tile(M, B, Cin, Cout, budget_bytes):
    """Mode-lane tile so the double-buffered, sublane-PADDED working set fits."""
    # bytes per single mode lane (f32, real+imag, x2 double-buffer per operand)
    a_bytes = 2 * 2 * B * _round_up(Cin, 8) * 4
    w_bytes = 2 * 2 * Cin * _round_up(Cout, 8) * 4
    o_bytes = 2 * 2 * B * _round_up(Cout, 8) * 4
    per_mode = a_bytes + w_bytes + o_bytes
    tm = max(128, (budget_bytes // per_mode) // 128 * 128)
    return int(min(tm, _round_up(M, 128)))


# ---------------------------------------------------------------------------
# Wrapper: einsum('bixy,ioxy->boxy') over the retained modes, via Pallas.
# ---------------------------------------------------------------------------
def compl_mul2d_pallas(a_modes, w_modes):
    """a_modes: (B, C_in, Mrows, m2) complex64; w_modes: (C_in, C_out, Mrows, m2).

    Returns einsum('bixy,ioxy->boxy', a_modes, w_modes) as complex64 with the
    channel contraction computed in a Pallas kernel (mode-last lane layout).
    """
    B, Cin, mrows, m2 = a_modes.shape
    Cout = w_modes.shape[1]
    M = mrows * m2

    # Mode axis is already trailing -> flatten only (no transposes, no stack).
    a_flat = a_modes.reshape(B, Cin, M)
    w_flat = w_modes.reshape(Cin, Cout, M)
    ar = jnp.real(a_flat).astype(jnp.float32)
    ai = jnp.imag(a_flat).astype(jnp.float32)
    wr = jnp.real(w_flat).astype(jnp.float32)
    wi = jnp.imag(w_flat).astype(jnp.float32)

    vmem_cap = _vmem_capacity_bytes()
    budget = max(8 * 1024 * 1024, int(vmem_cap * 0.35))   # working-set target
    vmem_limit = int(vmem_cap * 0.75)                      # headroom under cap

    tm = _choose_mode_tile(M, B, Cin, Cout, budget)
    n_tiles = pl.cdiv(M, tm)
    tm = _round_up(pl.cdiv(M, n_tiles), 128)               # balance the tiles
    Mp = n_tiles * tm
    if Mp != M:  # zero-pad the mode (lane) axis; padded modes are sliced off.
        pad = ((0, 0), (0, 0), (0, Mp - M))
        ar = jnp.pad(ar, pad)
        ai = jnp.pad(ai, pad)
        wr = jnp.pad(wr, pad)
        wi = jnp.pad(wi, pad)

    out_r, out_i = pl.pallas_call(
        _spectral_mix_kernel,
        out_shape=(
            jax.ShapeDtypeStruct((B, Cout, Mp), jnp.float32),
            jax.ShapeDtypeStruct((B, Cout, Mp), jnp.float32),
        ),
        grid=(n_tiles,),
        in_specs=[
            pl.BlockSpec((B, Cin, tm), lambda m: (0, 0, m)),
            pl.BlockSpec((B, Cin, tm), lambda m: (0, 0, m)),
            pl.BlockSpec((Cin, Cout, tm), lambda m: (0, 0, m)),
            pl.BlockSpec((Cin, Cout, tm), lambda m: (0, 0, m)),
        ],
        out_specs=[
            pl.BlockSpec((B, Cout, tm), lambda m: (0, 0, m)),
            pl.BlockSpec((B, Cout, tm), lambda m: (0, 0, m)),
        ],
        compiler_params=pltpu.CompilerParams(
            dimension_semantics=("parallel",),
            vmem_limit_bytes=vmem_limit,
        ),
    )(ar, ai, wr, wi)

    out = jax.lax.complex(out_r[..., :M], out_i[..., :M])   # (B, Cout, M)
    return out.reshape(B, Cout, mrows, m2)


# ---------------------------------------------------------------------------
# SpectralConv2d forward.
# ---------------------------------------------------------------------------
def spectral_conv2d_forward(x, weights1, weights2, modes1, modes2):
    """Forward pass of SpectralConv2d. x: (B, C_in, H, W) float32 (NCHW)."""
    B, Cin, H, W = x.shape
    Cout = weights1.shape[1]
    Wh = W // 2 + 1

    # TODO(synk): rfftn/irfftn have no Pallas TPU equivalent; they stay in XLA.
    x_ft = jnp.fft.rfftn(x, axes=(2, 3))                          # (B, Cin, H, Wh)

    # Fuse both frequency corners into one kernel launch by concatenating their
    # mode slabs along the row-mode axis (mode axis stays trailing).
    a_modes = jnp.concatenate(
        [x_ft[:, :, :modes1, :modes2], x_ft[:, :, H - modes1:, :modes2]], axis=2)
    w_modes = jnp.concatenate([weights1, weights2], axis=2)

    mixed = compl_mul2d_pallas(a_modes, w_modes)                  # (B,Cout,2*m1,m2)

    out_ft = jnp.zeros((B, Cout, H, Wh), dtype=jnp.complex64)
    out_ft = out_ft.at[:, :, :modes1, :modes2].set(mixed[:, :, :modes1, :])
    out_ft = out_ft.at[:, :, H - modes1:, :modes2].set(mixed[:, :, modes1:, :])

    return jnp.fft.irfftn(out_ft, s=(H, W), axes=(2, 3)).astype(jnp.float32)


if __name__ == "__main__":
    # Small, deterministic setup consistent with the module.
    B, Cin, Cout, H, W = 2, 4, 4, 16, 16
    modes1, modes2 = 4, 4
    scale = 1.0 / (Cin * Cout)

    key = jax.random.PRNGKey(0)
    kx, k1r, k1i, k2r, k2i = jax.random.split(key, 5)

    x = jax.random.normal(kx, (B, Cin, H, W), dtype=jnp.float32)
    # torch.rand(..., dtype=cfloat) -> uniform [0,1) real and imag parts.
    w1 = jax.lax.complex(
        scale * jax.random.uniform(k1r, (Cin, Cout, modes1, modes2), dtype=jnp.float32),
        scale * jax.random.uniform(k1i, (Cin, Cout, modes1, modes2), dtype=jnp.float32),
    )
    w2 = jax.lax.complex(
        scale * jax.random.uniform(k2r, (Cin, Cout, modes1, modes2), dtype=jnp.float32),
        scale * jax.random.uniform(k2i, (Cin, Cout, modes1, modes2), dtype=jnp.float32),
    )

    out = spectral_conv2d_forward(x, w1, w2, modes1, modes2)
    out = jax.block_until_ready(out)

    # Pure-JAX reference for the full forward (einsum instead of the Pallas kernel).
    x_ft = jnp.fft.rfftn(x, axes=(2, 3))
    ref_ft = jnp.zeros((B, Cout, H, W // 2 + 1), dtype=jnp.complex64)
    ref_ft = ref_ft.at[:, :, :modes1, :modes2].set(
        jnp.einsum("bixy,ioxy->boxy", x_ft[:, :, :modes1, :modes2], w1))
    ref_ft = ref_ft.at[:, :, H - modes1:, :modes2].set(
        jnp.einsum("bixy,ioxy->boxy", x_ft[:, :, -modes1:, :modes2], w2))
    ref = jnp.fft.irfftn(ref_ft, s=(H, W), axes=(2, 3)).astype(jnp.float32)

    assert out.shape == (B, Cout, H, W)
    # Tolerance accounts for Gauss 3-multiply vs naive complex product rounding;
    # any structural/indexing bug would be O(1) off.
    assert jnp.allclose(out, ref, atol=1e-3, rtol=1e-3), \
        float(jnp.max(jnp.abs(out - ref)))
    print("KERNEL_OK")
</pallas_src>

<mosaic_0001>
module attributes {stable_mosaic.version = 11 : i64} {
  func.func @_spectral_mix_kernel(%arg0: i32, %arg1: memref<2x4x128xf32, #tpu.memory_space<vmem>>, %arg2: memref<2x4x128xf32, #tpu.memory_space<vmem>>, %arg3: memref<4x4x128xf32, #tpu.memory_space<vmem>>, %arg4: memref<4x4x128xf32, #tpu.memory_space<vmem>>, %arg5: memref<2x4x128xf32, #tpu.memory_space<vmem>>, %arg6: memref<2x4x128xf32, #tpu.memory_space<vmem>>) attributes {dimension_semantics = [#tpu.dimension_semantics<parallel>], iteration_bounds = array<i64: 1>, scalar_prefetch = 0 : i64, scratch_operands = 0 : i64, tpu.core_type = #tpu.core_type<tc>, window_params = [{transform_indices = @transform_0, window_bounds = array<i64: 2, 4, 128>}, {transform_indices = @transform_1, window_bounds = array<i64: 2, 4, 128>}, {transform_indices = @transform_2, window_bounds = array<i64: 4, 4, 128>}, {transform_indices = @transform_3, window_bounds = array<i64: 4, 4, 128>}, {transform_indices = @transform_4, window_bounds = array<i64: 2, 4, 128>}, {transform_indices = @transform_5, window_bounds = array<i64: 2, 4, 128>}]} {
    %c0 = arith.constant 0 : index
    %c0_0 = arith.constant 0 : index
    %c0_1 = arith.constant 0 : index
    %0 = vector.load %arg1[%c0, %c0_0, %c0_1] : memref<2x4x128xf32, #tpu.memory_space<vmem>>, vector<2x4x128xf32>
    %c0_2 = arith.constant 0 : index
    %c0_3 = arith.constant 0 : index
    %c0_4 = arith.constant 0 : index
    %1 = vector.load %arg2[%c0_2, %c0_3, %c0_4] : memref<2x4x128xf32, #tpu.memory_space<vmem>>, vector<2x4x128xf32>
    %c0_5 = arith.constant 0 : index
    %c0_6 = arith.constant 0 : index
    %c0_7 = arith.constant 0 : index
    %2 = vector.load %arg3[%c0_5, %c0_6, %c0_7] : memref<4x4x128xf32, #tpu.memory_space<vmem>>, vector<4x4x128xf32>
    %c0_8 = arith.constant 0 : index
    %c0_9 = arith.constant 0 : index
    %c0_10 = arith.constant 0 : index
    %3 = vector.load %arg4[%c0_8, %c0_9, %c0_10] : memref<4x4x128xf32, #tpu.memory_space<vmem>>, vector<4x4x128xf32>
    %4 = vector.extract_strided_slice %0 {offsets = [0, 0, 0], sizes = [2, 1, 128], strides = [1, 1, 1]} : vector<2x4x128xf32> to vector<2x1x128xf32>
    %5 = vector.shape_cast %4 : vector<2x1x128xf32> to vector<2x128xf32>
    %6 = vector.shape_cast %5 : vector<2x128xf32> to vector<2x1x128xf32>
    %7 = vector.extract_strided_slice %1 {offsets = [0, 0, 0], sizes = [2, 1, 128], strides = [1, 1, 1]} : vector<2x4x128xf32> to vector<2x1x128xf32>
    %8 = vector.shape_cast %7 : vector<2x1x128xf32> to vector<2x128xf32>
    %9 = vector.shape_cast %8 : vector<2x128xf32> to vector<2x1x128xf32>
    %10 = vector.extract_strided_slice %2 {offsets = [0, 0, 0], sizes = [1, 4, 128], strides = [1, 1, 1]} : vector<4x4x128xf32> to vector<1x4x128xf32>
    %11 = vector.shape_cast %10 : vector<1x4x128xf32> to vector<4x128xf32>
    %12 = vector.shape_cast %11 : vector<4x128xf32> to vector<1x4x128xf32>
    %13 = vector.extract_strided_slice %3 {offsets = [0, 0, 0], sizes = [1, 4, 128], strides = [1, 1, 1]} : vector<4x4x128xf32> to vector<1x4x128xf32>
    %14 = vector.shape_cast %13 : vector<1x4x128xf32> to vector<4x128xf32>
    %15 = vector.shape_cast %14 : vector<4x128xf32> to vector<1x4x128xf32>
    %16 = arith.addf %6, %9 : vector<2x1x128xf32>
    %17 = vector.broadcast %16 : vector<2x1x128xf32> to vector<2x4x128xf32>
    %18 = vector.broadcast %12 : vector<1x4x128xf32> to vector<2x4x128xf32>
    %19 = arith.mulf %17, %18 : vector<2x4x128xf32>
    %20 = arith.subf %15, %12 : vector<1x4x128xf32>
    %21 = vector.broadcast %6 : vector<2x1x128xf32> to vector<2x4x128xf32>
    %22 = vector.broadcast %20 : vector<1x4x128xf32> to vector<2x4x128xf32>
    %23 = arith.mulf %21, %22 : vector<2x4x128xf32>
    %24 = arith.addf %15, %12 : vector<1x4x128xf32>
    %25 = vector.broadcast %9 : vector<2x1x128xf32> to vector<2x4x128xf32>
    %26 = vector.broadcast %24 : vector<1x4x128xf32> to vector<2x4x128xf32>
    %27 = arith.mulf %25, %26 : vector<2x4x128xf32>
    %28 = arith.subf %19, %27 : vector<2x4x128xf32>
    %29 = arith.addf %19, %23 : vector<2x4x128xf32>
    %30 = vector.extract_strided_slice %0 {offsets = [0, 1, 0], sizes = [2, 1, 128], strides = [1, 1, 1]} : vector<2x4x128xf32> to vector<2x1x128xf32>
    %31 = vector.shape_cast %30 : vector<2x1x128xf32> to vector<2x128xf32>
    %32 = vector.shape_cast %31 : vector<2x128xf32> to vector<2x1x128xf32>
    %33 = vector.extract_strided_slice %1 {offsets = [0, 1, 0], sizes = [2, 1, 128], strides = [1, 1, 1]} : vector<2x4x128xf32> to vector<2x1x128xf32>
    %34 = vector.shape_cast %33 : vector<2x1x128xf32> to vector<2x128xf32>
    %35 = vector.shape_cast %34 : vector<2x128xf32> to vector<2x1x128xf32>
    %36 = vector.extract_strided_slice %2 {offsets = [1, 0, 0], sizes = [1, 4, 128], strides = [1, 1, 1]} : vector<4x4x128xf32> to vector<1x4x128xf32>
    %37 = vector.shape_cast %36 : vector<1x4x128xf32> to vector<4x128xf32>
    %38 = vector.shape_cast %37 : vector<4x128xf32> to vector<1x4x128xf32>
    %39 = vector.extract_strided_slice %3 {offsets = [1, 0, 0], sizes = [1, 4, 128], strides = [1, 1, 1]} : vector<4x4x128xf32> to vector<1x4x128xf32>
    %40 = vector.shape_cast %39 : vector<1x4x128xf32> to vector<4x128xf32>
    %41 = vector.shape_cast %40 : vector<4x128xf32> to vector<1x4x128xf32>
    %42 = arith.addf %32, %35 : vector<2x1x128xf32>
    %43 = vector.broadcast %42 : vector<2x1x128xf32> to vector<2x4x128xf32>
    %44 = vector.broadcast %38 : vector<1x4x128xf32> to vector<2x4x128xf32>
    %45 = arith.mulf %43, %44 : vector<2x4x128xf32>
    %46 = arith.subf %41, %38 : vector<1x4x128xf32>
    %47 = vector.broadcast %32 : vector<2x1x128xf32> to vector<2x4x128xf32>
    %48 = vector.broadcast %46 : vector<1x4x128xf32> to vector<2x4x128xf32>
    %49 = arith.mulf %47, %48 : vector<2x4x128xf32>
    %50 = arith.addf %41, %38 : vector<1x4x128xf32>
    %51 = vector.broadcast %35 : vector<2x1x128xf32> to vector<2x4x128xf32>
    %52 = vector.broadcast %50 : vector<1x4x128xf32> to vector<2x4x128xf32>
    %53 = arith.mulf %51, %52 : vector<2x4x128xf32>
    %54 = arith.subf %45, %53 : vector<2x4x128xf32>
    %55 = arith.addf %45, %49 : vector<2x4x128xf32>
    %56 = arith.addf %28, %54 : vector<2x4x128xf32>
    %57 = arith.addf %29, %55 : vector<2x4x128xf32>
    %58 = vector.extract_strided_slice %0 {offsets = [0, 2, 0], sizes = [2, 1, 128], strides = [1, 1, 1]} : vector<2x4x128xf32> to vector<2x1x128xf32>
    %59 = vector.shape_cast %58 : vector<2x1x128xf32> to vector<2x128xf32>
    %60 = vector.shape_cast %59 : vector<2x128xf32> to vector<2x1x128xf32>
    %61 = vector.extract_strided_slice %1 {offsets = [0, 2, 0], sizes = [2, 1, 128], strides = [1, 1, 1]} : vector<2x4x128xf32> to vector<2x1x128xf32>
    %62 = vector.shape_cast %61 : vector<2x1x128xf32> to vector<2x128xf32>
    %63 = vector.shape_cast %62 : vector<2x128xf32> to vector<2x1x128xf32>
    %64 = vector.extract_strided_slice %2 {offsets = [2, 0, 0], sizes = [1, 4, 128], strides = [1, 1, 1]} : vector<4x4x128xf32> to vector<1x4x128xf32>
    %65 = vector.shape_cast %64 : vector<1x4x128xf32> to vector<4x128xf32>
    %66 = vector.shape_cast %65 : vector<4x128xf32> to vector<1x4x128xf32>
    %67 = vector.extract_strided_slice %3 {offsets = [2, 0, 0], sizes = [1, 4, 128], strides = [1, 1, 1]} : vector<4x4x128xf32> to vector<1x4x128xf32>
    %68 = vector.shape_cast %67 : vector<1x4x128xf32> to vector<4x128xf32>
    %69 = vector.shape_cast %68 : vector<4x128xf32> to vector<1x4x128xf32>
    %70 = arith.addf %60, %63 : vector<2x1x128xf32>
    %71 = vector.broadcast %70 : vector<2x1x128xf32> to vector<2x4x128xf32>
    %72 = vector.broadcast %66 : vector<1x4x128xf32> to vector<2x4x128xf32>
    %73 = arith.mulf %71, %72 : vector<2x4x128xf32>
    %74 = arith.subf %69, %66 : vector<1x4x128xf32>
    %75 = vector.broadcast %60 : vector<2x1x128xf32> to vector<2x4x128xf32>
    %76 = vector.broadcast %74 : vector<1x4x128xf32> to vector<2x4x128xf32>
    %77 = arith.mulf %75, %76 : vector<2x4x128xf32>
    %78 = arith.addf %69, %66 : vector<1x4x128xf32>
    %79 = vector.broadcast %63 : vector<2x1x128xf32> to vector<2x4x128xf32>
    %80 = vector.broadcast %78 : vector<1x4x128xf32> to vector<2x4x128xf32>
    %81 = arith.mulf %79, %80 : vector<2x4x128xf32>
    %82 = arith.subf %73, %81 : vector<2x4x128xf32>
    %83 = arith.addf %73, %77 : vector<2x4x128xf32>
    %84 = arith.addf %56, %82 : vector<2x4x128xf32>
    %85 = arith.addf %57, %83 : vector<2x4x128xf32>
    %86 = vector.extract_strided_slice %0 {offsets = [0, 3, 0], sizes = [2, 1, 128], strides = [1, 1, 1]} : vector<2x4x128xf32> to vector<2x1x128xf32>
    %87 = vector.shape_cast %86 : vector<2x1x128xf32> to vector<2x128xf32>
    %88 = vector.shape_cast %87 : vector<2x128xf32> to vector<2x1x128xf32>
    %89 = vector.extract_strided_slice %1 {offsets = [0, 3, 0], sizes = [2, 1, 128], strides = [1, 1, 1]} : vector<2x4x128xf32> to vector<2x1x128xf32>
    %90 = vector.shape_cast %89 : vector<2x1x128xf32> to vector<2x128xf32>
    %91 = vector.shape_cast %90 : vector<2x128xf32> to vector<2x1x128xf32>
    %92 = vector.extract_strided_slice %2 {offsets = [3, 0, 0], sizes = [1, 4, 128], strides = [1, 1, 1]} : vector<4x4x128xf32> to vector<1x4x128xf32>
    %93 = vector.shape_cast %92 : vector<1x4x128xf32> to vector<4x128xf32>
    %94 = vector.shape_cast %93 : vector<4x128xf32> to vector<1x4x128xf32>
    %95 = vector.extract_strided_slice %3 {offsets = [3, 0, 0], sizes = [1, 4, 128], strides = [1, 1, 1]} : vector<4x4x128xf32> to vector<1x4x128xf32>
    %96 = vector.shape_cast %95 : vector<1x4x128xf32> to vector<4x128xf32>
    %97 = vector.shape_cast %96 : vector<4x128xf32> to vector<1x4x128xf32>
    %98 = arith.addf %88, %91 : vector<2x1x128xf32>
    %99 = vector.broadcast %98 : vector<2x1x128xf32> to vector<2x4x128xf32>
    %100 = vector.broadcast %94 : vector<1x4x128xf32> to vector<2x4x128xf32>
    %101 = arith.mulf %99, %100 : vector<2x4x128xf32>
    %102 = arith.subf %97, %94 : vector<1x4x128xf32>
    %103 = vector.broadcast %88 : vector<2x1x128xf32> to vector<2x4x128xf32>
    %104 = vector.broadcast %102 : vector<1x4x128xf32> to vector<2x4x128xf32>
    %105 = arith.mulf %103, %104 : vector<2x4x128xf32>
    %106 = arith.addf %97, %94 : vector<1x4x128xf32>
    %107 = vector.broadcast %91 : vector<2x1x128xf32> to vector<2x4x128xf32>
    %108 = vector.broadcast %106 : vector<1x4x128xf32> to vector<2x4x128xf32>
    %109 = arith.mulf %107, %108 : vector<2x4x128xf32>
    %110 = arith.subf %101, %109 : vector<2x4x128xf32>
    %111 = arith.addf %101, %105 : vector<2x4x128xf32>
    %112 = arith.addf %84, %110 : vector<2x4x128xf32>
    %113 = arith.addf %85, %111 : vector<2x4x128xf32>
    %c0_11 = arith.constant 0 : index
    %c0_12 = arith.constant 0 : index
    %c0_13 = arith.constant 0 : index
    %114 = vector.load %arg5[%c0_11, %c0_12, %c0_13] : memref<2x4x128xf32, #tpu.memory_space<vmem>>, vector<2x4x128xf32>
    tpu.vector_store %arg5[%c0_11, %c0_12, %c0_13], %112 {strides = array<i32>} : memref<2x4x128xf32, #tpu.memory_space<vmem>>, vector<2x4x128xf32>,
    %c0_14 = arith.constant 0 : index
    %c0_15 = arith.constant 0 : index
    %c0_16 = arith.constant 0 : index
    %115 = vector.load %arg6[%c0_14, %c0_15, %c0_16] : memref<2x4x128xf32, #tpu.memory_space<vmem>>, vector<2x4x128xf32>
    tpu.vector_store %arg6[%c0_14, %c0_15, %c0_16], %113 {strides = array<i32>} : memref<2x4x128xf32, #tpu.memory_space<vmem>>, vector<2x4x128xf32>,
    return
  }
  func.func @transform_0(%arg0: i32) -> (i32, i32, i32) {
    %c0_i32 = arith.constant 0 : i32
    %c0_i32_0 = arith.constant 0 : i32
    %c0_i32_1 = arith.constant 0 : i32
    return %c0_i32, %c0_i32_0, %arg0 : i32, i32, i32
  }
  func.func @transform_1(%arg0: i32) -> (i32, i32, i32) {
    %c0_i32 = arith.constant 0 : i32
    %c0_i32_0 = arith.constant 0 : i32
    %c0_i32_1 = arith.constant 0 : i32
    return %c0_i32, %c0_i32_0, %arg0 : i32, i32, i32
  }
  func.func @transform_2(%arg0: i32) -> (i32, i32, i32) {
    %c0_i32 = arith.constant 0 : i32
    %c0_i32_0 = arith.constant 0 : i32
    %c0_i32_1 = arith.constant 0 : i32
    return %c0_i32, %c0_i32_0, %arg0 : i32, i32, i32
  }
  func.func @transform_3(%arg0: i32) -> (i32, i32, i32) {
    %c0_i32 = arith.constant 0 : i32
    %c0_i32_0 = arith.constant 0 : i32
    %c0_i32_1 = arith.constant 0 : i32
    return %c0_i32, %c0_i32_0, %arg0 : i32, i32, i32
  }
  func.func @transform_4(%arg0: i32) -> (i32, i32, i32) {
    %c0_i32 = arith.constant 0 : i32
    %c0_i32_0 = arith.constant 0 : i32
    %c0_i32_1 = arith.constant 0 : i32
    return %c0_i32, %c0_i32_0, %arg0 : i32, i32, i32
  }
  func.func @transform_5(%arg0: i32) -> (i32, i32, i32) {
    %c0_i32 = arith.constant 0 : i32
    %c0_i32_0 = arith.constant 0 : i32
    %c0_i32_1 = arith.constant 0 : i32
    return %c0_i32, %c0_i32_0, %arg0 : i32, i32, i32
  }
}

</mosaic_0001>

<bundles_post_ra>
// kernel: tpu_custom_call.1
= control target key start
LH: loop header
LB: loop body
LE: loop exit
PB: predicated region body
PF: predicated region fallthrough
CT: control target
= control target key end

     0   :  { %11 = vsyncpa [#allocation3], 0  ;;  %s555_s0 = inlined_call_operand.hbm [shape: f32[2,4,128], index: 0, kind: input, shape index: {}]   ;;  %s556_s1 = inlined_call_operand.hbm [shape: f32[2,4,128], index: 1, kind: input, shape index: {}]   ;;  %s557_s2 = inlined_call_operand.hbm [shape: f32[4,4,128], index: 2, kind: input, shape index: {}]   ;;  %s558_s3 = inlined_call_operand.hbm [shape: f32[4,4,128], index: 3, kind: input, shape index: {}]   ;;  %s559_s4 = inlined_call_operand.hbm [shape: f32[2,4,128], index: 4, kind: output, shape index: {0}]   ;;  %s560_s5 = inlined_call_operand.hbm [shape: f32[2,4,128], index: 5, kind: output, shape index: {1}]  }
   0x1   :  { %12 = vsyncpa [#allocation6], 0 }
   0x2   :  { %13 = vsyncpa [#allocation9], 0 }
   0x3   :  { %14 = vsyncpa [#allocation4], 0 }
   0x4   :  { %15 = vsyncpa [#allocation12], 0  ;;  %s423_s18 = smov [#allocation5]   ;;  %s424_s20 = smov [#allocation2]  }
   0x5   :  { %s33_s19 = sshll.u32 %s423_s18, 4  ;;  %s21_s21 = sshll.u32 %s424_s20, 4  ;;  %s34_s19 = int_to_ptr.vmem [resolvable:$true] %s33_s19  ;;  %s22_s21 = int_to_ptr.vmem [resolvable:$true] %s21_s21 }
   0x6   :  { %s301_s22 = scalar_lea.vmem %s34_s19, 128  ;;  %p306_p1 = scmp.lt.s32.totalorder %s34_s19, %s34_s19 }
   0x7   :  { %p302_p0 = scmp.ne.s32.totalorder %s34_s19, %s301_s22  ;;  %p307_p2 = scmp.lt.s32.totalorder %s301_s22, %s301_s22 }
   0x9   :  { %p308_p3 = por %p307_p2, %p306_p1 }
   0xb   :  { %p309_p4 = pnand %p308_p3, %p302_p0 }
   0xd   :  { %312 = shalt.err (!%p309_p4)
}
   0xe   :  { %s425_s23 = smov 64   ;;  %s426_s24 = smov 4  }
   0xf   :  { %39 = dma.hbm_to_vmem [thread:$0]  %s556_s1, 128, %s34_s19, [#allocation6], %s425_s23, %s425_s23, %s426_s24  }
  0x10   :  { %s321_s27 = scalar_lea.vmem %s22_s21, 128  ;;  %p326_p6 = scmp.lt.s32.totalorder %s22_s21, %s22_s21 }
  0x11   :  { %p322_p5 = scmp.ne.s32.totalorder %s22_s21, %s321_s27  ;;  %p327_p7 = scmp.lt.s32.totalorder %s321_s27, %s321_s27 }
  0x13   :  { %p328_p8 = por %p327_p7, %p326_p6 }
  0x15   :  { %p329_p9 = pnand %p328_p8, %p322_p5 }
  0x17   :  { %332 = shalt.err (!%p329_p9)
}
  0x18   :  { %27 = dma.hbm_to_vmem [thread:$0]  %s555_s0, 128, %s22_s21, [#allocation3], %s425_s23, %s425_s23, %s426_s24  }
  0x19   :  { %s427_s30 = smov [#allocation7]   ;;  %s428_s7 = smov [#allocation8]  }
  0x1a   :  { %s45_s6 = sshll.u32 %s427_s30, 4  ;;  %s57_s8 = sshll.u32 %s428_s7, 4  ;;  %s46_s6 = int_to_ptr.vmem [resolvable:$true] %s45_s6  ;;  %s58_s8 = int_to_ptr.vmem [resolvable:$true] %s57_s8 }
  0x1b   :  { %s341_s1 = scalar_lea.vmem %s46_s6, 256  ;;  %p346_p11 = scmp.lt.s32.totalorder %s46_s6, %s46_s6 }
  0x1c   :  { %p342_p10 = scmp.ne.s32.totalorder %s46_s6, %s341_s1  ;;  %p347_p12 = scmp.lt.s32.totalorder %s341_s1, %s341_s1 }
  0x1e   :  { %p348_p13 = por %p347_p12, %p346_p11 }
  0x20   :  { %p349_p0 = pnand %p348_p13, %p342_p10 }
  0x22   :  { %352 = shalt.err (!%p349_p0)
}
  0x23   :  { %51 = dma.hbm_to_vmem [thread:$0]  %s557_s2, 256, %s46_s6, [#allocation6], %s425_s23, %s425_s23, %s426_s24  }
  0x24   :  { %s361_s0 = scalar_lea.vmem %s58_s8, 256  ;;  %p366_p2 = scmp.lt.s32.totalorder %s58_s8, %s58_s8 }
  0x25   :  { %p362_p1 = scmp.ne.s32.totalorder %s58_s8, %s361_s0  ;;  %p367_p3 = scmp.lt.s32.totalorder %s361_s0, %s361_s0 }
  0x27   :  { %p368_p4 = por %p367_p3, %p366_p2 }
  0x29   :  { %p369_p5 = pnand %p368_p4, %p362_p1 }
  0x2b   :  { %372 = shalt.err (!%p369_p5)
}
  0x2c   :  { %63 = dma.hbm_to_vmem [thread:$0]  %s558_s3, 256, %s58_s8, [#allocation9], %s425_s23, %s425_s23, %s426_s24  }
  0x2d   :  { %413 = dma.done.wait [#allocation3], 128  }
  0x2e   :  { %414 = vsyncadd [#allocation3], 4294967168 }
  0x2f   :  { %415 = dma.done.wait [#allocation6], 384  }
  0x30   :  { %416 = vsyncadd [#allocation6], 4294966912 }
  0x31   :  { %417 = dma.done.wait [#allocation9], 256  }
  0x32   :  { %418 = vsyncadd [#allocation9], 4294967040  ;;  %v90_v0 = vlaneseq  ;;  %v493_v6 = vld [vmem:[#allocation2] sm:$0xf]  ;;  %v78_v7 = vld [vmem:[#allocation5] sm:$0xf] }
  0x33   :  { %v80_v8 = vld [vmem:[#allocation7] sm:$0xf]  ;;  %v81_v9 = vld [vmem:[#allocation7 + $0x4] sm:$0xf]  ;;  %v495_v10 = vld [vmem:[#allocation7 + $0x8] sm:$0xf]  ;;  %v88_v12 = vadd.f32 %v78_v7, %v493_v6 }
  0x34   :  { %v91_v1 = vshrl.u32 %v90_v0, 7  ;;  %v497_v11 = vld [vmem:[#allocation7 + $0xc] sm:$0xf]  ;;  %v84_v16 = vld [vmem:[#allocation8] sm:$0xf]  ;;  %s429_s2 = smov [#allocation10]  }
  0x35   :  { %v85_v17 = vld [vmem:[#allocation8 + $0x4] sm:$0xf]  ;;  %v86_v18 = vld [vmem:[#allocation8 + $0x8] sm:$0xf]  ;;  %v87_v23 = vld [vmem:[#allocation8 + $0xc] sm:$0xf]  ;;  %v111_v25 = vadd.f32 %v84_v16, %v80_v8  ;;  %v100_v0 = vsub.f32 %v84_v16, %v80_v8 }
  0x36   :  { %v485_v2 = vsub.s32 0, %v91_v1  ;;  %v487_v3 = vsub.s32 1, %v91_v1  ;;  %v489_v4 = vsub.s32 2, %v91_v1  ;;  %v491_v5 = vsub.s32 3, %v91_v1  ;;  %v516_v32 = vld [vmem:[#allocation2 + $0x4] sm:$0xf] }
  0x37   :  { %v147_v27 = vadd.f32 %v85_v17, %v81_v9  ;;  %v187_v29 = vadd.f32 %v86_v18, %v495_v10  ;;  %v227_v31 = vadd.f32 %v87_v23, %v497_v11  ;;  %v79_v33 = vld [vmem:[#allocation5 + $0x4] sm:$0xf]  ;;  %v136_v1 = vsub.f32 %v85_v17, %v81_v9  ;;  %s255_s3 = sshll.u32 %s429_s2, 4  ;;  %s256_s3 = int_to_ptr.vmem [resolvable:$true] %s255_s3 }
  0x38   :  { %v115_v13 = vrot.slane %v78_v7, %v485_v2  ;;  %v151_v14 = vrot.slane %v78_v7, %v487_v3  ;;  %v191_v15 = vrot.slane %v78_v7, %v489_v4  ;;  %v231_v19 = vrot.slane %v78_v7, %v491_v5  ;;  %s373_s13 = scalar_lea.vmem %s256_s3, 128  ;;  %p378_p7 = scmp.lt.s32.totalorder %s256_s3, %s256_s3 }
  0x39   :  { %v104_v20 = vrot.slane %v493_v6, %v485_v2  ;;  %v140_v21 = vrot.slane %v493_v6, %v487_v3  ;;  %v180_v22 = vrot.slane %v493_v6, %v489_v4  ;;  %v93_v24 = vrot.slane %v88_v12, %v485_v2  ;;  %p374_p6 = scmp.ne.s32.totalorder %s256_s3, %s373_s13  ;;  %p379_p8 = scmp.lt.s32.totalorder %s373_s13, %s373_s13 }
  0x3a   :  { %v129_v26 = vrot.slane %v88_v12, %v487_v3  ;;  %v169_v28 = vrot.slane %v88_v12, %v489_v4  ;;  %v209_v30 = vrot.slane %v88_v12, %v491_v5  ;;  %v120_v35 = vmul.f32 %v115_v13, %v111_v25 }
  0x3b   :  { %v98_v34 = vmul.f32 %v93_v24, %v80_v8  ;;  %v156_v37 = vmul.f32 %v151_v14, %v147_v27  ;;  %v196_v39 = vmul.f32 %v191_v15, %v187_v29  ;;  %v236_v41 = vmul.f32 %v231_v19, %v227_v31  ;;  %p380_p9 = por %p379_p8, %p378_p7 }
  0x3c   :  { %v134_v36 = vmul.f32 %v129_v26, %v81_v9  ;;  %v174_v38 = vmul.f32 %v169_v28, %v495_v10  ;;  %v214_v40 = vmul.f32 %v209_v30, %v497_v11  ;;  %v89_v44 = vadd.f32 %v79_v33, %v516_v32 }
  0x3d   :  { %v122_v42 = vsub.f32 %v98_v34, %v120_v35  ;;  %v119_v45 = vrot.slane %v79_v33, %v485_v2  ;;  %v155_v48 = vrot.slane %v79_v33, %v487_v3  ;;  %v195_v49 = vrot.slane %v79_v33, %v489_v4  ;;  %p381_p10 = pnand %p380_p9, %p374_p6 }
  0x3e   :  { %v158_v43 = vsub.f32 %v134_v36, %v156_v37  ;;  %v198_v46 = vsub.f32 %v174_v38, %v196_v39  ;;  %v238_v47 = vsub.f32 %v214_v40, %v236_v41  ;;  %v97_v51 = vrot.slane %v89_v44, %v485_v2 }
  0x3f   :  { %v121_v52 = vmul.f32 %v119_v45, %v111_v25  ;;  %v133_v53 = vrot.slane %v89_v44, %v487_v3  ;;  %v157_v54 = vmul.f32 %v155_v48, %v147_v27  ;;  %v173_v55 = vrot.slane %v89_v44, %v489_v4 }
  0x40   :  { %v162_v50 = vadd.f32 %v158_v43, %v122_v42  ;;  %v197_v56 = vmul.f32 %v195_v49, %v187_v29  ;;  %v213_v57 = vrot.slane %v89_v44, %v491_v5  ;;  %v99_v59 = vmul.f32 %v97_v51, %v80_v8 }
  0x41   :  { %v135_v60 = vmul.f32 %v133_v53, %v81_v9  ;;  %v235_v61 = vrot.slane %v79_v33, %v491_v5  ;;  %v175_v62 = vmul.f32 %v173_v55, %v495_v10  ;;  %v109_v19 = vmul.f32 %v104_v20, %v100_v0 }
  0x42   :  { %v202_v58 = vadd.f32 %v198_v46, %v162_v50  ;;  %v215_v63 = vmul.f32 %v213_v57, %v497_v11  ;;  %v123_v12 = vsub.f32 %v99_v59, %v121_v52  ;;  %v145_v24 = vmul.f32 %v140_v21, %v136_v1 }
  0x43   :  { %v159_v13 = vsub.f32 %v135_v60, %v157_v54  ;;  %v237_v14 = vmul.f32 %v235_v61, %v227_v31  ;;  %v199_v15 = vsub.f32 %v175_v62, %v197_v56  ;;  %v176_v25 = vsub.f32 %v86_v18, %v495_v10 }
  0x44   :  { %v242_v7 = vadd.f32 %v238_v47, %v202_v58  ;;  %v216_v28 = vsub.f32 %v87_v23, %v497_v11  ;;  %v220_v29 = vrot.slane %v493_v6, %v491_v5  ;;  %v124_v30 = vadd.f32 %v109_v19, %v98_v34 }
  0x45   :  { %v163_v26 = vadd.f32 %v159_v13, %v123_v12  ;;  %v239_v27 = vsub.f32 %v215_v63, %v237_v14  ;;  %v160_v8 = vadd.f32 %v145_v24, %v134_v36  ;;  %v185_v9 = vmul.f32 %v180_v22, %v176_v25 }
  0x46   :  { %246 = vst [vmem:[#allocation10] sm:$0xf] %v242_v7  ;;  %v108_v16 = vrot.slane %v516_v32, %v485_v2  ;;  %v225_v20 = vmul.f32 %v220_v29, %v216_v28  ;;  %v144_v10 = vrot.slane %v516_v32, %v487_v3  ;;  %v184_v18 = vrot.slane %v516_v32, %v489_v4 }
  0x47   :  { %v203_v17 = vadd.f32 %v199_v15, %v163_v26  ;;  %v164_v11 = vadd.f32 %v160_v8, %v124_v30  ;;  %v200_v21 = vadd.f32 %v185_v9, %v174_v38  ;;  %v224_v6 = vrot.slane %v516_v32, %v491_v5 }
  0x48   :  { %v110_v23 = vmul.f32 %v108_v16, %v100_v0  ;;  %v240_v31 = vadd.f32 %v225_v20, %v214_v40  ;;  %v146_v33 = vmul.f32 %v144_v10, %v136_v1  ;;  %v186_v2 = vmul.f32 %v184_v18, %v176_v25 }
  0x49   :  { %v243_v22 = vadd.f32 %v239_v27, %v203_v17  ;;  %v204_v34 = vadd.f32 %v200_v21, %v164_v11  ;;  %v226_v36 = vmul.f32 %v224_v6, %v216_v28 }
  0x4a   :  { %v125_v35 = vadd.f32 %v110_v23, %v99_v59  ;;  %v161_v37 = vadd.f32 %v146_v33, %v135_v60  ;;  %v201_v3 = vadd.f32 %v186_v2, %v175_v62 }
  0x4b   :  { %247 = vst [vmem:[#allocation10 + $0x4] sm:$0xf] %v243_v22  ;;  %v244_v39 = vadd.f32 %v240_v31, %v204_v34 }
  0x4c   :  { %384 = shalt.err (!%p381_p10)
}
  0x4d   :  { %261 = dma.vmem_to_hbm [thread:$0]  %s256_s3, 128, %s559_s4, [#allocation4], %s425_s23, %s425_s23, %s426_s24   ;;  %v165_v4 = vadd.f32 %v161_v37, %v125_v35  ;;  %v241_v5 = vadd.f32 %v226_v36, %v215_v63  ;;  %248 = vst [vmem:[#allocation11] sm:$0xf] %v244_v39 }
  0x4e   :  { %s430_s16 = smov [#allocation11]  }
  0x4f   :  { %s267_s17 = sshll.u32 %s430_s16, 4  ;;  %v205_v32 = vadd.f32 %v201_v3, %v165_v4  ;;  %s268_s17 = int_to_ptr.vmem [resolvable:$true] %s267_s17 }
  0x50   :  { %s393_s18 = scalar_lea.vmem %s268_s17, 128  ;;  %p398_p12 = scmp.lt.s32.totalorder %s268_s17, %s268_s17 }
  0x51   :  { %v245_v38 = vadd.f32 %v241_v5, %v205_v32  ;;  %p394_p11 = scmp.ne.s32.totalorder %s268_s17, %s393_s18  ;;  %p399_p13 = scmp.lt.s32.totalorder %s393_s18, %s393_s18 }
  0x53   :  { %249 = vst [vmem:[#allocation11 + $0x4] sm:$0xf] %v245_v38  ;;  %p400_p0 = por %p399_p13, %p398_p12 }
  0x55   :  { %p401_p1 = pnand %p400_p0, %p394_p11 }
  0x57   :  { %404 = shalt.err (!%p401_p1)
}
  0x58   :  { %273 = dma.vmem_to_hbm [thread:$0]  %s268_s17, 128, %s560_s5, [#allocation12], %s425_s23, %s425_s23, %s426_s24  }
  0x59   :  { %419 = dma.done.wait [#allocation4], 128  }
  0x5a   :  { %420 = vsyncadd [#allocation4], 4294967168 }
  0x5b   :  { %421 = dma.done.wait [#allocation12], 128  }
  0x5c   :  { %422 = vsyncadd [#allocation12], 4294967168 }
  0x5d   :  { %280 = vsyncpa [#allocation3], 1 }
  0x5e   :  { %281 = vsyncpa [#allocation6], 1 }
  0x5f   :  { %282 = vsyncpa [#allocation9], 1 }
  0x60   :  { %283 = vsyncpa [#allocation4], 1 }
  0x61   :  { %284 = vsyncpa [#allocation12], 1 }

</bundles_post_ra>
